<compile_context>
chip_gen: v5e
topology: v5e:2x2
jax: 0.10.0
libtpu: 0.0.40
codegen_flags: <defaults>
</compile_context>

<pallas_src>
import jax
import jax.numpy as jnp
from jax.experimental import pallas as pl
from jax.experimental.pallas import tpu as pltpu

OBS_DIM = 55
A1_DIM = 10
A2_DIM = 10
A_DIM = A1_DIM + A2_DIM              # 20 (actions merged into one operand)
IN_DIM = OBS_DIM + A_DIM             # 75
HIDDEN = 128
OUT_DIM = 35
NEG_SLOPE = 0.01                     # torch F.leaky_relu default

_MAX_TILE_B = 2048                   # ~6 MiB/step incl. double buffers -> fits every gen
_SINGLE_STEP_MAX_B = 511             # below this: one grid step (latency path)


def _mlp_kernel(obs_ref, act_ref,
                w1o_ref, w1a_ref, b1_ref,
                w2_ref, b2_ref,
                w3_ref, b3_ref,
                o_ref):
    # first_layer: Linear(75 -> 128); the concat is fused as two partial dots.
    h = (jnp.dot(obs_ref[...], w1o_ref[...], preferred_element_type=jnp.float32)
         + jnp.dot(act_ref[...], w1a_ref[...], preferred_element_type=jnp.float32)
         + b1_ref[...])

    # hidden layer: leaky_relu(Linear(128 -> 128))
    h = jnp.dot(h, w2_ref[...], preferred_element_type=jnp.float32) + b2_ref[...]
    h = jnp.where(h >= 0, h, NEG_SLOPE * h)

    # final_layer: Linear(128 -> 35); block last dim equals the full output width.
    o_ref[...] = (jnp.dot(h, w3_ref[...], preferred_element_type=jnp.float32)
                  + b3_ref[...]).astype(o_ref.dtype)


def init_params(key, dtype=jnp.float32):
    """Deterministic init matching torch.nn.Linear's U(-1/sqrt(fan_in), +1/sqrt(fan_in)).
    Weights stored as (in_features, out_features) so the kernel computes x @ W + b."""
    def linear(k, fan_in, fan_out):
        kw, kb = jax.random.split(k)
        bound = 1.0 / jnp.sqrt(fan_in)
        w = jax.random.uniform(kw, (fan_in, fan_out), dtype, -bound, bound)
        b = jax.random.uniform(kb, (1, fan_out), dtype, -bound, bound)
        return w, b

    k1, k2, k3 = jax.random.split(key, 3)
    w1, b1 = linear(k1, IN_DIM, HIDDEN)
    w2, b2 = linear(k2, HIDDEN, HIDDEN)
    w3, b3 = linear(k3, HIDDEN, OUT_DIM)
    return {"w1": w1, "b1": b1, "w2": w2, "b2": b2, "w3": w3, "b3": b3}


def prepare_params(params):
    """One-time weight prep: split W1 at the obs|actions boundary so the concat
    is fused into the kernel. All weights stay f32 (kernel is HBM-bound, not MXU-bound)."""
    w1 = params["w1"].astype(jnp.float32)
    return (w1[:OBS_DIM, :],                        # (55, 128)
            w1[OBS_DIM:, :],                        # (20, 128)  rows for [a1; a2]
            params["b1"].astype(jnp.float32),       # (1, 128)
            params["w2"].astype(jnp.float32),       # (128, 128)
            params["b2"].astype(jnp.float32),       # (1, 128)
            params["w3"].astype(jnp.float32),       # (128, 35)
            params["b3"].astype(jnp.float32))       # (1, 35)


def _choose_tiling(B):
    """Return (n_steps, tile_b)."""
    if B <= _SINGLE_STEP_MAX_B:
        # Single grid step; block == full array dims (always legal), no padding.
        return 1, B
    # >= 2 steps so both v7x TensorCores get work; cap per-step rows at _MAX_TILE_B.
    n_steps = max(2, pl.cdiv(B, _MAX_TILE_B))
    tile_b = pl.cdiv(B, n_steps)
    tile_b = ((tile_b + 7) // 8) * 8       # sublane-aligned; pads B by < 8*n_steps rows
    return n_steps, tile_b


def predictor_forward(observation, action_j1, action_j2, prepared):
    w1o, w1a, b1, w2, b2, w3, b3 = prepared
    B = observation.shape[0]

    # Merge the two tiny action inputs into one operand: fewer DMA streams,
    # fewer VMEM double-buffer pairs, one less dot in the kernel.
    actions = jnp.concatenate([action_j1, action_j2], axis=1)   # (B, 20)

    n_steps, tile_b = _choose_tiling(B)
    Bp = n_steps * tile_b
    pad = Bp - B
    if pad:
        observation = jnp.pad(observation, ((0, pad), (0, 0)))
        actions = jnp.pad(actions, ((0, pad), (0, 0)))

    def batch_spec(feat):
        return pl.BlockSpec((tile_b, feat), lambda i: (i, 0))

    def resident_spec(arr):
        # Full array, same block every grid step -> stays resident in VMEM.
        return pl.BlockSpec(arr.shape, lambda i: (0, 0))

    weight_bytes = 4 * (w1o.size + w1a.size + b1.size +
                        w2.size + b2.size + w3.size + b3.size)
    cost = pl.CostEstimate(
        flops=2 * Bp * (IN_DIM * HIDDEN + HIDDEN * HIDDEN + HIDDEN * OUT_DIM),
        transcendentals=0,
        bytes_accessed=Bp * 4 * (IN_DIM + OUT_DIM) + weight_bytes)

    out = pl.pallas_call(
        _mlp_kernel,
        out_shape=jax.ShapeDtypeStruct((Bp, OUT_DIM), jnp.float32),
        grid=(n_steps,),
        in_specs=[
            batch_spec(OBS_DIM), batch_spec(A_DIM),
            resident_spec(w1o), resident_spec(w1a), resident_spec(b1),
            resident_spec(w2), resident_spec(b2),
            resident_spec(w3), resident_spec(b3),
        ],
        out_specs=batch_spec(OUT_DIM),
        compiler_params=pltpu.CompilerParams(
            dimension_semantics=("parallel",)),
        cost_estimate=cost,
    )(observation, actions, w1o, w1a, b1, w2, b2, w3, b3)

    return out[:B] if pad else out


def _reference_forward(observation, action_j1, action_j2, p):
    """Pure-JAX f32 reference (mirrors the torch module)."""
    x = jnp.concatenate([observation, action_j1, action_j2], axis=1)
    h = x @ p["w1"] + p["b1"]
    h = h @ p["w2"] + p["b2"]
    h = jnp.where(h >= 0, h, NEG_SLOPE * h)
    return h @ p["w3"] + p["b3"]


if __name__ == "__main__":
    key = jax.random.PRNGKey(0)
    k_obs, k_a1, k_a2, k_params = jax.random.split(key, 4)

    B = 4
    observation = jax.random.normal(k_obs, (B, OBS_DIM), jnp.float32)
    action_j1 = jax.random.normal(k_a1, (B, A1_DIM), jnp.float32)
    action_j2 = jax.random.normal(k_a2, (B, A2_DIM), jnp.float32)

    params = init_params(k_params)
    prepared = prepare_params(params)

    out = predictor_forward(observation, action_j1, action_j2, prepared)
    out = jax.block_until_ready(out)

    ref = _reference_forward(observation, action_j1, action_j2, params)
    assert out.shape == (B, OUT_DIM), out.shape
    # f32 operands / f32 accumulation on both sides; tolerance covers accumulation-order
    # differences between the fused split-dot layer 1 and the reference's single dot.
    assert jnp.allclose(out, ref, atol=1e-2, rtol=1e-2), "mismatch vs JAX reference"

    print("KERNEL_OK")
</pallas_src>

<mosaic_0001>
module attributes {stable_mosaic.version = 11 : i64} {
  func.func @_mlp_kernel(%arg0: i32, %arg1: memref<4x55xf32, #tpu.memory_space<vmem>>, %arg2: memref<4x20xf32, #tpu.memory_space<vmem>>, %arg3: memref<55x128xf32, #tpu.memory_space<vmem>>, %arg4: memref<20x128xf32, #tpu.memory_space<vmem>>, %arg5: memref<1x128xf32, #tpu.memory_space<vmem>>, %arg6: memref<128x128xf32, #tpu.memory_space<vmem>>, %arg7: memref<1x128xf32, #tpu.memory_space<vmem>>, %arg8: memref<128x35xf32, #tpu.memory_space<vmem>>, %arg9: memref<1x35xf32, #tpu.memory_space<vmem>>, %arg10: memref<4x35xf32, #tpu.memory_space<vmem>>) attributes {dimension_semantics = [#tpu.dimension_semantics<parallel>], iteration_bounds = array<i64: 1>, scalar_prefetch = 0 : i64, scratch_operands = 0 : i64, tpu.core_type = #tpu.core_type<tc>, window_params = [{transform_indices = @transform_0, window_bounds = array<i64: 4, 55>}, {transform_indices = @transform_1, window_bounds = array<i64: 4, 20>}, {pipeline_mode = #tpu.pipeline_mode<synchronous>, transform_indices = @transform_2, window_bounds = array<i64: 55, 128>}, {pipeline_mode = #tpu.pipeline_mode<synchronous>, transform_indices = @transform_3, window_bounds = array<i64: 20, 128>}, {pipeline_mode = #tpu.pipeline_mode<synchronous>, transform_indices = @transform_4, window_bounds = array<i64: 1, 128>}, {pipeline_mode = #tpu.pipeline_mode<synchronous>, transform_indices = @transform_5, window_bounds = array<i64: 128, 128>}, {pipeline_mode = #tpu.pipeline_mode<synchronous>, transform_indices = @transform_6, window_bounds = array<i64: 1, 128>}, {pipeline_mode = #tpu.pipeline_mode<synchronous>, transform_indices = @transform_7, window_bounds = array<i64: 128, 35>}, {pipeline_mode = #tpu.pipeline_mode<synchronous>, transform_indices = @transform_8, window_bounds = array<i64: 1, 35>}, {transform_indices = @transform_9, window_bounds = array<i64: 4, 35>}]} {
    %c0 = arith.constant 0 : index
    %c0_0 = arith.constant 0 : index
    %0 = vector.load %arg1[%c0, %c0_0] : memref<4x55xf32, #tpu.memory_space<vmem>>, vector<4x55xf32>
    %c0_1 = arith.constant 0 : index
    %c0_2 = arith.constant 0 : index
    %1 = vector.load %arg3[%c0_1, %c0_2] : memref<55x128xf32, #tpu.memory_space<vmem>>, vector<55x128xf32>
    %cst = arith.constant dense<0.000000e+00> : vector<4x128xf32>
    %2 = tpu.matmul %0, %1, %cst {dimension_numbers = #tpu.dot_dimension_numbers<[1], [0], [0], [1], [0, 0, 1, 1], [], []>} : vector<4x55xf32>, vector<55x128xf32>, vector<4x128xf32> -> vector<4x128xf32>
    %c0_3 = arith.constant 0 : index
    %c0_4 = arith.constant 0 : index
    %3 = vector.load %arg2[%c0_3, %c0_4] : memref<4x20xf32, #tpu.memory_space<vmem>>, vector<4x20xf32>
    %c0_5 = arith.constant 0 : index
    %c0_6 = arith.constant 0 : index
    %4 = vector.load %arg4[%c0_5, %c0_6] : memref<20x128xf32, #tpu.memory_space<vmem>>, vector<20x128xf32>
    %cst_7 = arith.constant dense<0.000000e+00> : vector<4x128xf32>
    %5 = tpu.matmul %3, %4, %cst_7 {dimension_numbers = #tpu.dot_dimension_numbers<[1], [0], [0], [1], [0, 0, 1, 1], [], []>} : vector<4x20xf32>, vector<20x128xf32>, vector<4x128xf32> -> vector<4x128xf32>
    %6 = arith.addf %2, %5 : vector<4x128xf32>
    %c0_8 = arith.constant 0 : index
    %c0_9 = arith.constant 0 : index
    %7 = vector.load %arg5[%c0_8, %c0_9] : memref<1x128xf32, #tpu.memory_space<vmem>>, vector<1x128xf32>
    %8 = vector.broadcast %7 : vector<1x128xf32> to vector<4x128xf32>
    %9 = arith.addf %6, %8 : vector<4x128xf32>
    %c0_10 = arith.constant 0 : index
    %c0_11 = arith.constant 0 : index
    %10 = vector.load %arg6[%c0_10, %c0_11] : memref<128x128xf32, #tpu.memory_space<vmem>>, vector<128x128xf32>
    %cst_12 = arith.constant dense<0.000000e+00> : vector<4x128xf32>
    %11 = tpu.matmul %9, %10, %cst_12 {dimension_numbers = #tpu.dot_dimension_numbers<[1], [0], [0], [1], [0, 0, 1, 1], [], []>} : vector<4x128xf32>, vector<128x128xf32>, vector<4x128xf32> -> vector<4x128xf32>
    %c0_13 = arith.constant 0 : index
    %c0_14 = arith.constant 0 : index
    %12 = vector.load %arg7[%c0_13, %c0_14] : memref<1x128xf32, #tpu.memory_space<vmem>>, vector<1x128xf32>
    %13 = vector.broadcast %12 : vector<1x128xf32> to vector<4x128xf32>
    %14 = arith.addf %11, %13 : vector<4x128xf32>
    %cst_15 = arith.constant 0.000000e+00 : f32
    %15 = vector.broadcast %cst_15 : f32 to vector<4x128xf32>
    %16 = arith.cmpf oge, %14, %15 : vector<4x128xf32>
    %cst_16 = arith.constant 0.00999999977 : f32
    %17 = vector.broadcast %cst_16 : f32 to vector<4x128xf32>
    %18 = arith.mulf %17, %14 : vector<4x128xf32>
    %19 = arith.select %16, %14, %18 : vector<4x128xi1>, vector<4x128xf32>
    %c0_17 = arith.constant 0 : index
    %c0_18 = arith.constant 0 : index
    %20 = vector.load %arg8[%c0_17, %c0_18] : memref<128x35xf32, #tpu.memory_space<vmem>>, vector<128x35xf32>
    %cst_19 = arith.constant dense<0.000000e+00> : vector<4x35xf32>
    %21 = tpu.matmul %19, %20, %cst_19 {dimension_numbers = #tpu.dot_dimension_numbers<[1], [0], [0], [1], [0, 0, 1, 1], [], []>} : vector<4x128xf32>, vector<128x35xf32>, vector<4x35xf32> -> vector<4x35xf32>
    %c0_20 = arith.constant 0 : index
    %c0_21 = arith.constant 0 : index
    %22 = vector.load %arg9[%c0_20, %c0_21] : memref<1x35xf32, #tpu.memory_space<vmem>>, vector<1x35xf32>
    %23 = vector.broadcast %22 : vector<1x35xf32> to vector<4x35xf32>
    %24 = arith.addf %21, %23 : vector<4x35xf32>
    %c0_22 = arith.constant 0 : index
    %c0_23 = arith.constant 0 : index
    %25 = vector.load %arg10[%c0_22, %c0_23] : memref<4x35xf32, #tpu.memory_space<vmem>>, vector<4x35xf32>
    tpu.vector_store %arg10[%c0_22, %c0_23], %24 {strides = array<i32>} : memref<4x35xf32, #tpu.memory_space<vmem>>, vector<4x35xf32>,
    return
  }
  func.func @transform_0(%arg0: i32) -> (i32, i32) {
    %c0_i32 = arith.constant 0 : i32
    %c0_i32_0 = arith.constant 0 : i32
    return %arg0, %c0_i32 : i32, i32
  }
  func.func @transform_1(%arg0: i32) -> (i32, i32) {
    %c0_i32 = arith.constant 0 : i32
    %c0_i32_0 = arith.constant 0 : i32
    return %arg0, %c0_i32 : i32, i32
  }
  func.func @transform_2(%arg0: i32) -> (i32, i32) {
    %c0_i32 = arith.constant 0 : i32
    %c0_i32_0 = arith.constant 0 : i32
    %c0_i32_1 = arith.constant 0 : i32
    return %c0_i32, %c0_i32_0 : i32, i32
  }
  func.func @transform_3(%arg0: i32) -> (i32, i32) {
    %c0_i32 = arith.constant 0 : i32
    %c0_i32_0 = arith.constant 0 : i32
    %c0_i32_1 = arith.constant 0 : i32
    return %c0_i32, %c0_i32_0 : i32, i32
  }
  func.func @transform_4(%arg0: i32) -> (i32, i32) {
    %c0_i32 = arith.constant 0 : i32
    %c0_i32_0 = arith.constant 0 : i32
    %c0_i32_1 = arith.constant 0 : i32
    return %c0_i32, %c0_i32_0 : i32, i32
  }
  func.func @transform_5(%arg0: i32) -> (i32, i32) {
    %c0_i32 = arith.constant 0 : i32
    %c0_i32_0 = arith.constant 0 : i32
    %c0_i32_1 = arith.constant 0 : i32
    return %c0_i32, %c0_i32_0 : i32, i32
  }
  func.func @transform_6(%arg0: i32) -> (i32, i32) {
    %c0_i32 = arith.constant 0 : i32
    %c0_i32_0 = arith.constant 0 : i32
    %c0_i32_1 = arith.constant 0 : i32
    return %c0_i32, %c0_i32_0 : i32, i32
  }
  func.func @transform_7(%arg0: i32) -> (i32, i32) {
    %c0_i32 = arith.constant 0 : i32
    %c0_i32_0 = arith.constant 0 : i32
    %c0_i32_1 = arith.constant 0 : i32
    return %c0_i32, %c0_i32_0 : i32, i32
  }
  func.func @transform_8(%arg0: i32) -> (i32, i32) {
    %c0_i32 = arith.constant 0 : i32
    %c0_i32_0 = arith.constant 0 : i32
    %c0_i32_1 = arith.constant 0 : i32
    return %c0_i32, %c0_i32_0 : i32, i32
  }
  func.func @transform_9(%arg0: i32) -> (i32, i32) {
    %c0_i32 = arith.constant 0 : i32
    %c0_i32_0 = arith.constant 0 : i32
    return %arg0, %c0_i32 : i32, i32
  }
}

</mosaic_0001>

<bundles_post_ra>
// kernel: tpu_custom_call.1
= control target key start
LH: loop header
LB: loop body
LE: loop exit
PB: predicated region body
PF: predicated region fallthrough
CT: control target
= control target key end

     0   :  { %14 = vsyncpa [#allocation3], 0  ;;  %s467_s0 = inlined_call_operand.vmem [shape: f32[4,55], index: 0, kind: input, shape index: {}]   ;;  %s468_s1 = inlined_call_operand.vmem [shape: f32[4,20], index: 1, kind: input, shape index: {}]   ;;  %s469_s2 = inlined_call_operand.hbm [shape: f32[55,128], index: 2, kind: input, shape index: {}]   ;;  %s470_s3 = inlined_call_operand.vmem [shape: f32[20,128], index: 3, kind: input, shape index: {}]   ;;  %s471_s4 = inlined_call_operand.vmem [shape: f32[1,128], index: 4, kind: input, shape index: {}]   ;;  %s472_s5 = inlined_call_operand.vmem [shape: f32[128,128], index: 5, kind: input, shape index: {}]   ;;  %s473_s6 = inlined_call_operand.vmem [shape: f32[1,128], index: 6, kind: input, shape index: {}]   ;;  %s474_s7 = inlined_call_operand.vmem [shape: f32[128,35], index: 7, kind: input, shape index: {}]   ;;  %s475_s8 = inlined_call_operand.vmem [shape: f32[1,35], index: 8, kind: input, shape index: {}]   ;;  %s476_s9 = inlined_call_operand.hbm [shape: f32[4,35], index: 9, kind: output, shape index: {}]  }
   0x1   :  { %15 = vsyncpa [#allocation4], 0  ;;  %s24_s11 = sshll.u32 %s469_s2, 4  ;;  %s287_s12 = smov [#allocation2]   ;;  %s25_s11 = int_to_ptr.hbm [resolvable:$true] %s24_s11 }
   0x2   :  { %s26_s13 = sshll.u32 %s287_s12, 4  ;;  %s288_s14 = smov 128   ;;  %s27_s13 = int_to_ptr.vmem [resolvable:$true] %s26_s13 }
   0x3   :  { %s289_s15 = smov 8  }
   0x4   :  { %32 = dma.hbm_to_vmem [thread:$0]  %s25_s11, 896, %s27_s13, [#allocation3], %s288_s14, %s288_s14, %s289_s15  }
   0x5   :  { %283 = dma.done.wait [#allocation3], 896  }
   0x6   :  { %284 = vsyncadd [#allocation3], 4294966400  ;;  %vm93_vm0 = vcmask 1046528   ;;  %vm65_vm1 = vcmask 1043456   ;;  %v56_v0 = vld [vmem:[#allocation2 + $0x30] sm:$0x7f] }
   0x7   :  { %v55_v1 = vld [vmem:[#allocation2 + $0x28] sm:$0xff]  ;;  %226 = vmatpush.msk.msra.mxu1 %vm93_vm0, %v56_v0  ;;  %v60_v2 = vld [vmem:[%s470_s3 + $0x10] sm:$0xf]  ;;  %v54_v3 = vld [vmem:[#allocation2 + $0x20] sm:$0xff]  ;;  %vm61_vm2 = vcmask 162816   ;;  %vm89_vm3 = vcmask 449536  }
   0x8   :  { %224 = vmatpush.msk.msra.mxu0 %vm65_vm1, %v60_v2  ;;  %v59_v4 = vld [vmem:[%s470_s3 + $0x8] sm:$0xff]  ;;  %v58_v5 = vld [vmem:[%s470_s3] sm:$0xff]  ;;  %v53_v6 = vld [vmem:[#allocation2 + $0x18] sm:$0xff]  ;;  %s290_s2 = smov [#allocation5]   ;;  %s214_s20 = sshll.u32 %s476_s9, 4  ;;  %vm205_vm5 = vcmask 281600   ;;  %s215_s20 = int_to_ptr.hbm [resolvable:$true] %s214_s20 }
   0x9   :  { %107 = vmatpush.msra.mxu1 %v55_v1  ;;  %v57_v7 = vld [vmem:[%s468_s1] sm:$0xf]  ;;  %v137_v8 = vld [vmem:[%s472_s5 + $0x78] sm:$0xff]  ;;  %v136_v9 = vld [vmem:[%s472_s5 + $0x70] sm:$0xff]  ;;  %s212_s18 = sshll.u32 %s290_s2, 4  ;;  %s213_s18 = int_to_ptr.vmem [resolvable:$true] %s212_s18 }
   0xa   :  { %83 = vmatpush.msra.mxu0 %v59_v4  ;;  %142 = vmatpush.msra.mxu2 %v137_v8  ;;  %v52_v10 = vld [vmem:[#allocation2 + $0x10] sm:$0xff]  ;;  %v135_v11 = vld [vmem:[%s472_s5 + $0x68] sm:$0xff]  ;;  %v134_v13 = vld [vmem:[%s472_s5 + $0x60] sm:$0xff] }
   0xb   :  { %108 = vmatpush.msra.mxu1 %v54_v3  ;;  %v51_v12 = vld [vmem:[#allocation2 + $0x8] sm:$0xff]  ;;  %v50_v14 = vld [vmem:[#allocation2] sm:$0xff]  ;;  %v133_v16 = vld [vmem:[%s472_s5 + $0x58] sm:$0xff] }
   0xc   :  { %84 = vmatpush.msra.mxu0 %v58_v5  ;;  %143 = vmatpush.msra.mxu2 %v136_v9  ;;  %v49_v15 = vld [vmem:[%s467_s0] sm:$0xf]  ;;  %v132_v17 = vld [vmem:[%s472_s5 + $0x50] sm:$0xff]  ;;  %v131_v18 = vld [vmem:[%s472_s5 + $0x48] sm:$0xff] }
   0xd   :  { %109 = vmatpush.msra.mxu1 %v53_v6  ;;  %225 = vmatmul.msk.f32.vlgmr.msra.gmra.mxu0 %vm61_vm2, %v57_v7  ;;  %v130_v19 = vld [vmem:[%s472_s5 + $0x40] sm:$0xff]  ;;  %v129_v20 = vld [vmem:[%s472_s5 + $0x38] sm:$0xff]  ;;  %v128_v21 = vld [vmem:[%s472_s5 + $0x30] sm:$0xff] }
   0xe   :  { %144 = vmatpush.msra.mxu2 %v135_v11  ;;  %v127_v22 = vld [vmem:[%s472_s5 + $0x28] sm:$0xff]  ;;  %v126_v23 = vld [vmem:[%s472_s5 + $0x20] sm:$0xff]  ;;  %v125_v24 = vld [vmem:[%s472_s5 + $0x18] sm:$0xff] }
   0xf   :  { %110 = vmatpush.msra.mxu1 %v52_v10  ;;  %v124_v25 = vld [vmem:[%s472_s5 + $0x10] sm:$0xff]  ;;  %v123_v26 = vld [vmem:[%s472_s5 + $0x8] sm:$0xff]  ;;  %v122_v27 = vld [vmem:[%s472_s5] sm:$0xff] }
  0x10   :  { %145 = vmatpush.msra.mxu2 %v134_v13  ;;  %v180_v28 = vld [vmem:[%s474_s7 + $0x78] sm:$0xff]  ;;  %v179_v29 = vld [vmem:[%s474_s7 + $0x70] sm:$0xff]  ;;  %v178_v30 = vld [vmem:[%s474_s7 + $0x68] sm:$0xff] }
  0x11   :  { %111 = vmatpush.msra.mxu1 %v51_v12  ;;  %185 = vmatpush.msra.mxu3 %v180_v28  ;;  %v177_v31 = vld [vmem:[%s474_s7 + $0x60] sm:$0xff]  ;;  %v176_v32 = vld [vmem:[%s474_s7 + $0x58] sm:$0xff]  ;;  %v175_v33 = vld [vmem:[%s474_s7 + $0x50] sm:$0xff] }
  0x12   :  { %146 = vmatpush.msra.mxu2 %v133_v16  ;;  %v174_v34 = vld [vmem:[%s474_s7 + $0x48] sm:$0xff]  ;;  %v173_v35 = vld [vmem:[%s474_s7 + $0x40] sm:$0xff]  ;;  %v172_v36 = vld [vmem:[%s474_s7 + $0x38] sm:$0xff] }
  0x13   :  { %112 = vmatpush.msra.mxu1 %v50_v14  ;;  %186 = vmatpush.msra.mxu3 %v179_v29  ;;  %v171_v37 = vld [vmem:[%s474_s7 + $0x30] sm:$0xff]  ;;  %v170_v38 = vld [vmem:[%s474_s7 + $0x28] sm:$0xff]  ;;  %v169_v39 = vld [vmem:[%s474_s7 + $0x20] sm:$0xff] }
  0x14   :  { %227 = vmatmul.msk.f32.vlgmr.msra.gmra.mxu1 %vm89_vm3, %v49_v15  ;;  %147 = vmatpush.msra.mxu2 %v132_v17  ;;  %v168_v40 = vld [vmem:[%s474_s7 + $0x18] sm:$0xff]  ;;  %v232_v42 = vld [vmem:[%s471_s4] ss:$0 sm:$0xff]  ;;  %v167_v46 = vld [vmem:[%s474_s7 + $0x10] sm:$0xff] }
  0x15   :  { %187 = vmatpush.msra.mxu3 %v178_v30  ;;  %v166_v47 = vld [vmem:[%s474_s7 + $0x8] sm:$0xff]  ;;  %v165_v48 = vld [vmem:[%s474_s7] sm:$0xff] }
  0x16   :  { %148 = vmatpush.msra.mxu2 %v131_v18  ;;  %v233_v49 = vld [vmem:[%s473_s6] ss:$0 sm:$0xff] }
  0x17   :  { %188 = vmatpush.msra.mxu3 %v177_v31  ;;  %v234_v54 = vld [vmem:[%s475_s8] ss:$0 sm:$0xff] }
  0x18   :  { %149 = vmatpush.msra.mxu2 %v130_v19 }
  0x19   :  { %189 = vmatpush.msra.mxu3 %v176_v32 }
  0x1a   :  { %150 = vmatpush.msra.mxu2 %v129_v20 }
  0x1b   :  { %190 = vmatpush.msra.mxu3 %v175_v33 }
  0x1c   :  { %151 = vmatpush.msra.mxu2 %v128_v21 }
  0x1d   :  { %191 = vmatpush.msra.mxu3 %v174_v34 }
  0x1e   :  { %152 = vmatpush.msra.mxu2 %v127_v22 }
  0x1f   :  { %192 = vmatpush.msra.mxu3 %v173_v35 }
  0x20   :  { %153 = vmatpush.msra.mxu2 %v126_v23 }
  0x21   :  { %193 = vmatpush.msra.mxu3 %v172_v36 }
  0x22   :  { %154 = vmatpush.msra.mxu2 %v125_v24 }
  0x23   :  { %194 = vmatpush.msra.mxu3 %v171_v37 }
  0x24   :  { %155 = vmatpush.msra.mxu2 %v124_v25 }
  0x25   :  { %195 = vmatpush.msra.mxu3 %v170_v38 }
  0x26   :  { %156 = vmatpush.msra.mxu2 %v123_v26 }
  0x27   :  { %196 = vmatpush.msra.mxu3 %v169_v39 }
  0x28   :  { %157 = vmatpush.msra.mxu2 %v122_v27 }
  0x29   :  { %197 = vmatpush.msra.mxu3 %v168_v40 }
  0x2b   :  { %198 = vmatpush.msra.mxu3 %v167_v46 }
  0x2d   :  { %199 = vmatpush.msra.mxu3 %v166_v47 }
  0x2f   :  { %200 = vmatpush.msra.mxu3 %v165_v48 }
  0x8a   :  { %v86_v41 = vpop.f32.mrf.mxu0 }
  0x91   :  { %v114_v43 = vpop.f32.mrf.mxu1 }
  0x92   :  { %v115_v44 = vadd.f32 %v114_v43, %v86_v41 }
  0x94   :  { %v121_v45 = vadd.f32 %v232_v42, %v115_v44 }
  0x96   :  { %158 = vmatmul.f32.vlgmr.msra.gmra.mxu2 %v121_v45 }
 0x119   :  { %v159_v50 = vpop.f32.mrf.mxu2 }
 0x11a   :  { %v160_v51 = vadd.f32 %v233_v49, %v159_v50 }
 0x11c   :  { %vm162_vm4 = vcmp.ge.f32.partialorder %v160_v51, 0.0  ;;  %v163_v52 = vmul.f32 0.01, %v160_v51 }
 0x11e   :  { %v164_v53 = vsel %vm162_vm4, %v160_v51, %v163_v52 }
 0x11f   :  { %201 = vmatmul.f32.vlgmr.msra.gmra.mxu3 %v164_v53 }
 0x1a2   :  { %v202_v55 = vpop.f32.mrf.mxu3 }
 0x1a3   :  { %v203_v56 = vadd.f32 %v234_v54, %v202_v55 }
 0x1a5   :  { %206 = vst.msk [vmem:[#allocation5] sm:$0xf] %vm205_vm5, %v203_v56 }
 0x1a6   :  { %217 = dma.vmem_to_hbm [thread:$0]  %s213_s18, 64, %s215_s20, [#allocation4]  }
 0x1a7   :  { %285 = dma.done.wait [#allocation4], 64  }
 0x1a8   :  { %286 = vsyncadd [#allocation4], 4294967232 }
 0x1a9   :  { %222 = vsyncpa [#allocation3], 1 }
 0x1aa   :  { %223 = vsyncpa [#allocation4], 1 }

</bundles_post_ra>
